<compile_context>
chip_gen: v6e
topology: v6e:2x2x1
jax: 0.10.0
libtpu: 0.0.40
codegen_flags: <defaults>
</compile_context>

<pallas_src>
import jax
import jax.numpy as jnp
from jax.experimental import pallas as pl
from jax.experimental.pallas import tpu as pltpu

# ---------------- small, module-consistent config ----------------
B         = 2
N_PTS     = 16
PT_DIM    = 3
MLP1_FS   = [32, 32]          # ConvMLP hidden widths
BOTTLE_FS = 32
MLP2_FS   = [32, 32]          # LinearMLP widths (module multiplies by pt_dim -> 96)
BN_EPS    = 1e-5

N_CONV  = len(MLP1_FS) + 1                    # pt_dim -> ... -> bottle_fs
N_LIN   = len(MLP2_FS)                        # bottle_fs -> ... (each * pt_dim)
OUT_DIM = N_PTS * PT_DIM

LANE     = 128                                # TPU vreg lane width
SEG_W    = LANE                               # rows per packed weight segment
SEG_B    = 8                                  # rows per packed bias segment (row 0 used)
SEG      = SEG_W + SEG_B                      # 136 rows per layer (multiple of 8)
N_LAYERS = N_CONV + N_LIN + 1
PACK_ROWS = N_LAYERS * SEG                    # 816 rows, width 128


# ---------------- parameter init (deterministic, in-script) ----------------
def _kaiming(key, c_out, c_in):
    # kaiming_normal_ (fan_in, gain sqrt(2)) for Conv1d(ks=1) / Linear weights
    return jax.random.normal(key, (c_out, c_in), jnp.float32) * jnp.sqrt(2.0 / c_in)


def _bn_fold(key, c):
    k1, k2, k3, k4 = jax.random.split(key, 4)
    gamma = 1.0 + 0.1 * jax.random.normal(k1, (c,), jnp.float32)
    beta  = 0.1 * jax.random.normal(k2, (c,), jnp.float32)
    mean  = 0.1 * jax.random.normal(k3, (c,), jnp.float32)
    var   = 1.0 + 0.1 * jax.random.uniform(k4, (c,), jnp.float32)
    scale = gamma / jnp.sqrt(var + BN_EPS)
    shift = beta - mean * scale
    return scale.reshape(1, c), shift.reshape(1, c)


def init_params(key):
    keys = iter(jax.random.split(key, 64))
    params = {"mlp1": [], "mlp2": []}

    chain1 = [PT_DIM] + MLP1_FS + [BOTTLE_FS]
    for c_in, c_out in zip(chain1[:-1], chain1[1:]):
        w = _kaiming(next(keys), c_out, c_in)          # Conv1d weight (C_out, C_in, 1) squeezed
        b = jnp.zeros((1, c_out), jnp.float32)         # conv bias init to 0
        s, t = _bn_fold(next(keys), c_out)
        params["mlp1"].append((w.T, b, s, t))          # pre-transposed weight (C_in, C_out)

    mlp2_widths = [f * PT_DIM for f in MLP2_FS]
    chain2 = [BOTTLE_FS] + mlp2_widths
    for c_in, c_out in zip(chain2[:-1], chain2[1:]):
        w = _kaiming(next(keys), c_out, c_in)          # Linear weight (bias=False because bn=True)
        s, t = _bn_fold(next(keys), c_out)
        params["mlp2"].append((w.T, s, t))

    w_out = _kaiming(next(keys), OUT_DIM, mlp2_widths[-1])
    params["out_wt"] = w_out.T                         # (mlp2_last, n_pts*pt_dim)
    params["out_b"]  = jnp.zeros((1, OUT_DIM), jnp.float32)
    return params


# ---------------- one-time host-side folding + packing ----------------
def pack_params(params):
    """Fold BN (scale, shift) and conv bias into every layer (W' = W_T * s,
    b' = b * s + t), zero-pad to 128 lanes, and pack all layers into one
    tile-aligned (PACK_ROWS, 128) f32 buffer:
      layer i: rows [i*SEG, i*SEG+128)   -> weight (input dim zero-padded to 128)
               row   i*SEG+128           -> bias
    Exact w.r.t. the unpadded math (zero weights / zero bias in padded slots)."""
    layers = []
    for (wt, b, s, t) in params["mlp1"]:
        layers.append((wt * s, (b * s + t)))
    for (wt, s, t) in params["mlp2"]:
        layers.append((wt * s, t))
    layers.append((params["out_wt"], params["out_b"]))

    buf = jnp.zeros((PACK_ROWS, LANE), jnp.float32)
    for i, (w_f, b_f) in enumerate(layers):
        c_in, c_out = w_f.shape
        off = i * SEG
        buf = buf.at[off:off + c_in, :c_out].set(w_f)
        buf = buf.at[off + SEG_W, :c_out].set(b_f.reshape(-1))
    return buf


# ---------------- Pallas kernel ----------------
def make_kernel(n_conv, n_lin, batch, n_pts):
    def kernel(x_ref, p_ref, out_ref):
        # Static, 8-sublane-aligned slices of the packed VMEM param buffer are
        # zero-cost views: offsets 136*i and 136*i+128 are all multiples of 8.
        def layer(h, idx, relu=True):
            off = idx * SEG
            w = p_ref[off:off + SEG_W, :]                       # (128, 128)
            b = p_ref[off + SEG_W:off + SEG_W + 1, :]           # (1, 128)
            y = jnp.dot(h, w, preferred_element_type=jnp.float32) + b
            return jnp.maximum(y, 0.0) if relu else y

        # mlp1: per-point 1x1 convs == one matmul per layer over all B*N rows.
        h = x_ref[...]                                          # (B*N_pts, 128)
        for i in range(n_conv):
            h = layer(h, i)

        # per-sample max-pool over the point axis (sublane-axis XLU reduction;
        # the reshape splits at a multiple of 8 so it is relayout-free).
        h3 = h.reshape(batch, n_pts, LANE)                      # (B, N_pts, 128)
        g = jnp.max(h3, axis=1)                                 # (B, 128)

        # mlp2: linears (BN folded) + ReLU
        h2 = g
        for i in range(n_lin):
            h2 = layer(h2, n_conv + i)

        # output linear (bias included, no activation)
        recon = layer(h2, n_conv + n_lin, relu=False)           # (B, 128)

        # merged, lane-dense output: glob in lanes 0-127, recon in lanes 128-255
        out_ref[:, :LANE] = g
        out_ref[:, LANE:] = recon
    return kernel


_KERNEL = make_kernel(N_CONV, N_LIN, B, N_PTS)


@jax.jit
def pointnet_ae_forward(x, packed_params):
    # channel-last, all points of all samples as rows; lane-pad features 3->128
    x2 = x.reshape(B * N_PTS, PT_DIM)
    x_pad = jnp.pad(x2, ((0, 0), (0, LANE - PT_DIM)))

    vmem_spec = pl.BlockSpec(memory_space=pltpu.MemorySpace.VMEM)
    out = pl.pallas_call(
        _KERNEL,
        out_shape=jax.ShapeDtypeStruct((B, 2 * LANE), jnp.float32),
        in_specs=[vmem_spec, vmem_spec],
        out_specs=vmem_spec,
    )(x_pad, packed_params)

    glob  = out[:, :BOTTLE_FS]
    recon = out[:, LANE:LANE + OUT_DIM].reshape(B, N_PTS, PT_DIM)
    return recon, glob


# ---------------- pure-JAX reference (unfolded, unpadded math) ----------------
def reference_forward(x, params):
    h = x                                                       # (B, N, D)
    for (wt, b, s, t) in params["mlp1"]:
        h = jnp.maximum((h @ wt + b) * s + t, 0.0)
    g = jnp.max(h, axis=1)                                      # (B, bottle_fs)
    h2 = g
    for (wt, s, t) in params["mlp2"]:
        h2 = jnp.maximum((h2 @ wt) * s + t, 0.0)
    out = h2 @ params["out_wt"] + params["out_b"]
    return out.reshape(B, N_PTS, PT_DIM), g


if __name__ == "__main__":
    key = jax.random.PRNGKey(0)
    k_x, k_p = jax.random.split(key)
    x = jax.random.normal(k_x, (B, N_PTS, PT_DIM), jnp.float32)
    params = init_params(k_p)

    # one-time fold + pack (hoisted out of the forward path)
    packed = jax.block_until_ready(pack_params(params))

    recon, global_fs = pointnet_ae_forward(x, packed)
    recon = jax.block_until_ready(recon)
    global_fs = jax.block_until_ready(global_fs)

    recon_ref, glob_ref = reference_forward(x, params)
    assert recon.shape == (B, N_PTS, PT_DIM)
    assert global_fs.shape == (B, BOTTLE_FS)
    assert jnp.allclose(recon, recon_ref, rtol=1e-4, atol=1e-4)
    assert jnp.allclose(global_fs, glob_ref, rtol=1e-4, atol=1e-4)

    print("KERNEL_OK")
</pallas_src>

<mosaic_0001>
module attributes {stable_mosaic.version = 11 : i64} {
  func.func @kernel(%arg0: memref<32x128xf32, #tpu.memory_space<vmem>>, %arg1: memref<816x128xf32, #tpu.memory_space<vmem>>, %arg2: memref<2x256xf32, #tpu.memory_space<vmem>>) attributes {dimension_semantics = [], scalar_prefetch = 0 : i64, scratch_operands = 0 : i64, tpu.core_type = #tpu.core_type<tc>} {
    %c0 = arith.constant 0 : index
    %c0_0 = arith.constant 0 : index
    %0 = vector.load %arg0[%c0, %c0_0] : memref<32x128xf32, #tpu.memory_space<vmem>>, vector<32x128xf32>
    %c0_1 = arith.constant 0 : index
    %c0_2 = arith.constant 0 : index
    %1 = vector.load %arg1[%c0_1, %c0_2] : memref<816x128xf32, #tpu.memory_space<vmem>>, vector<128x128xf32>
    %c128 = arith.constant 128 : index
    %c0_3 = arith.constant 0 : index
    %2 = vector.load %arg1[%c128, %c0_3] : memref<816x128xf32, #tpu.memory_space<vmem>>, vector<1x128xf32>
    %cst = arith.constant dense<0.000000e+00> : vector<32x128xf32>
    %3 = tpu.matmul %0, %1, %cst {dimension_numbers = #tpu.dot_dimension_numbers<[1], [0], [0], [1], [0, 0, 1, 1], [], []>} : vector<32x128xf32>, vector<128x128xf32>, vector<32x128xf32> -> vector<32x128xf32>
    %4 = vector.broadcast %2 : vector<1x128xf32> to vector<32x128xf32>
    %5 = arith.addf %3, %4 : vector<32x128xf32>
    %cst_4 = arith.constant 0.000000e+00 : f32
    %6 = vector.broadcast %cst_4 : f32 to vector<32x128xf32>
    %7 = arith.maximumf %5, %6 : vector<32x128xf32>
    %c136 = arith.constant 136 : index
    %c0_5 = arith.constant 0 : index
    %8 = vector.load %arg1[%c136, %c0_5] : memref<816x128xf32, #tpu.memory_space<vmem>>, vector<128x128xf32>
    %c264 = arith.constant 264 : index
    %c0_6 = arith.constant 0 : index
    %9 = vector.load %arg1[%c264, %c0_6] : memref<816x128xf32, #tpu.memory_space<vmem>>, vector<1x128xf32>
    %cst_7 = arith.constant dense<0.000000e+00> : vector<32x128xf32>
    %10 = tpu.matmul %7, %8, %cst_7 {dimension_numbers = #tpu.dot_dimension_numbers<[1], [0], [0], [1], [0, 0, 1, 1], [], []>} : vector<32x128xf32>, vector<128x128xf32>, vector<32x128xf32> -> vector<32x128xf32>
    %11 = vector.broadcast %9 : vector<1x128xf32> to vector<32x128xf32>
    %12 = arith.addf %10, %11 : vector<32x128xf32>
    %cst_8 = arith.constant 0.000000e+00 : f32
    %13 = vector.broadcast %cst_8 : f32 to vector<32x128xf32>
    %14 = arith.maximumf %12, %13 : vector<32x128xf32>
    %c272 = arith.constant 272 : index
    %c0_9 = arith.constant 0 : index
    %15 = vector.load %arg1[%c272, %c0_9] : memref<816x128xf32, #tpu.memory_space<vmem>>, vector<128x128xf32>
    %c400 = arith.constant 400 : index
    %c0_10 = arith.constant 0 : index
    %16 = vector.load %arg1[%c400, %c0_10] : memref<816x128xf32, #tpu.memory_space<vmem>>, vector<1x128xf32>
    %cst_11 = arith.constant dense<0.000000e+00> : vector<32x128xf32>
    %17 = tpu.matmul %14, %15, %cst_11 {dimension_numbers = #tpu.dot_dimension_numbers<[1], [0], [0], [1], [0, 0, 1, 1], [], []>} : vector<32x128xf32>, vector<128x128xf32>, vector<32x128xf32> -> vector<32x128xf32>
    %18 = vector.broadcast %16 : vector<1x128xf32> to vector<32x128xf32>
    %19 = arith.addf %17, %18 : vector<32x128xf32>
    %cst_12 = arith.constant 0.000000e+00 : f32
    %20 = vector.broadcast %cst_12 : f32 to vector<32x128xf32>
    %21 = arith.maximumf %19, %20 : vector<32x128xf32>
    %22 = vector.shape_cast %21 : vector<32x128xf32> to vector<2x16x128xf32>
    %cst_13 = arith.constant dense<0xFF800000> : vector<2x128xf32>
    %23 = vector.multi_reduction <maximumf>, %22, %cst_13 [1] : vector<2x16x128xf32> to vector<2x128xf32>
    %c408 = arith.constant 408 : index
    %c0_14 = arith.constant 0 : index
    %24 = vector.load %arg1[%c408, %c0_14] : memref<816x128xf32, #tpu.memory_space<vmem>>, vector<128x128xf32>
    %c536 = arith.constant 536 : index
    %c0_15 = arith.constant 0 : index
    %25 = vector.load %arg1[%c536, %c0_15] : memref<816x128xf32, #tpu.memory_space<vmem>>, vector<1x128xf32>
    %cst_16 = arith.constant dense<0.000000e+00> : vector<2x128xf32>
    %26 = tpu.matmul %23, %24, %cst_16 {dimension_numbers = #tpu.dot_dimension_numbers<[1], [0], [0], [1], [0, 0, 1, 1], [], []>} : vector<2x128xf32>, vector<128x128xf32>, vector<2x128xf32> -> vector<2x128xf32>
    %27 = vector.broadcast %25 : vector<1x128xf32> to vector<2x128xf32>
    %28 = arith.addf %26, %27 : vector<2x128xf32>
    %cst_17 = arith.constant 0.000000e+00 : f32
    %29 = vector.broadcast %cst_17 : f32 to vector<2x128xf32>
    %30 = arith.maximumf %28, %29 : vector<2x128xf32>
    %c544 = arith.constant 544 : index
    %c0_18 = arith.constant 0 : index
    %31 = vector.load %arg1[%c544, %c0_18] : memref<816x128xf32, #tpu.memory_space<vmem>>, vector<128x128xf32>
    %c672 = arith.constant 672 : index
    %c0_19 = arith.constant 0 : index
    %32 = vector.load %arg1[%c672, %c0_19] : memref<816x128xf32, #tpu.memory_space<vmem>>, vector<1x128xf32>
    %cst_20 = arith.constant dense<0.000000e+00> : vector<2x128xf32>
    %33 = tpu.matmul %30, %31, %cst_20 {dimension_numbers = #tpu.dot_dimension_numbers<[1], [0], [0], [1], [0, 0, 1, 1], [], []>} : vector<2x128xf32>, vector<128x128xf32>, vector<2x128xf32> -> vector<2x128xf32>
    %34 = vector.broadcast %32 : vector<1x128xf32> to vector<2x128xf32>
    %35 = arith.addf %33, %34 : vector<2x128xf32>
    %cst_21 = arith.constant 0.000000e+00 : f32
    %36 = vector.broadcast %cst_21 : f32 to vector<2x128xf32>
    %37 = arith.maximumf %35, %36 : vector<2x128xf32>
    %c680 = arith.constant 680 : index
    %c0_22 = arith.constant 0 : index
    %38 = vector.load %arg1[%c680, %c0_22] : memref<816x128xf32, #tpu.memory_space<vmem>>, vector<128x128xf32>
    %c808 = arith.constant 808 : index
    %c0_23 = arith.constant 0 : index
    %39 = vector.load %arg1[%c808, %c0_23] : memref<816x128xf32, #tpu.memory_space<vmem>>, vector<1x128xf32>
    %cst_24 = arith.constant dense<0.000000e+00> : vector<2x128xf32>
    %40 = tpu.matmul %37, %38, %cst_24 {dimension_numbers = #tpu.dot_dimension_numbers<[1], [0], [0], [1], [0, 0, 1, 1], [], []>} : vector<2x128xf32>, vector<128x128xf32>, vector<2x128xf32> -> vector<2x128xf32>
    %41 = vector.broadcast %39 : vector<1x128xf32> to vector<2x128xf32>
    %42 = arith.addf %40, %41 : vector<2x128xf32>
    %c0_25 = arith.constant 0 : index
    %c0_26 = arith.constant 0 : index
    %43 = vector.load %arg2[%c0_25, %c0_26] : memref<2x256xf32, #tpu.memory_space<vmem>>, vector<2x128xf32>
    tpu.vector_store %arg2[%c0_25, %c0_26], %23 {strides = array<i32>} : memref<2x256xf32, #tpu.memory_space<vmem>>, vector<2x128xf32>,
    %c0_27 = arith.constant 0 : index
    %c128_28 = arith.constant 128 : index
    %44 = vector.load %arg2[%c0_27, %c128_28] : memref<2x256xf32, #tpu.memory_space<vmem>>, vector<2x128xf32>
    tpu.vector_store %arg2[%c0_27, %c128_28], %42 {strides = array<i32>} : memref<2x256xf32, #tpu.memory_space<vmem>>, vector<2x128xf32>,
    return
  }
}

</mosaic_0001>

<bundles_post_ra>
// kernel: pointnet_ae_forward.1
= control target key start
LH: loop header
LB: loop body
LE: loop exit
PB: predicated region body
PF: predicated region fallthrough
CT: control target
= control target key end

     0   :  { %7 = vsyncpa [#allocation3], 0  ;;  %s1051_s9 = smov [#allocation2]   ;;  %s1147_s0 = inlined_call_operand.vmem [shape: f32[32,128], index: 0, kind: input, shape index: {}]   ;;  %s1148_s1 = inlined_call_operand.hbm [shape: f32[816,128], index: 1, kind: input, shape index: {}]   ;;  %s1149_s2 = inlined_call_operand.vmem [shape: f32[2,256], index: 2, kind: output, shape index: {}]  }
   0x1   :  { %s15_s10 = sshll.u32 %s1051_s9, 4  ;;  %s16_s10 = int_to_ptr.vmem [resolvable:$true] %s15_s10 }
   0x2   :  { %s1037_s11 = scalar_lea.vmem %s16_s10, 13056  ;;  %p1042_p1 = scmp.lt.s32.totalorder %s16_s10, %s16_s10 }
   0x3   :  { %p1038_p0 = scmp.ne.s32.totalorder %s16_s10, %s1037_s11  ;;  %p1043_p2 = scmp.lt.s32.totalorder %s1037_s11, %s1037_s11 }
   0x5   :  { %p1044_p3 = por %p1043_p2, %p1042_p1 }
   0x7   :  { %p1045_p4 = pnand %p1044_p3, %p1038_p0 }
   0x9   :  { %1048 = shalt.err (!%p1045_p4)
}
   0xa   :  { %s1052_s12 = smov 128   ;;  %s1053_s13 = smov 8  }
   0xb   :  { %21 = dma.hbm_to_vmem [thread:$0]  %s1148_s1, 13056, %s16_s10, [#allocation3], %s1052_s12, %s1052_s12, %s1053_s13  }
   0xc   :  { %1049 = dma.done.wait [#allocation3], 13056  }
   0xd   :  { %1050 = vsyncadd [#allocation3], 4294954240  ;;  %v44_v0 = vld [vmem:[#allocation2 + $0x78] sm:$0xff]  ;;  %v43_v1 = vld [vmem:[#allocation2 + $0x70] sm:$0xff]  ;;  %vm1055_vm0 = vmmov 0   ;;  %vm396_vm1 = vcmask 1041409  }
   0xe   :  { %804 = vmatprep.subr.mxu0 %v44_v0  ;;  %v42_v2 = vld [vmem:[#allocation2 + $0x68] sm:$0xff]  ;;  %v41_v3 = vld [vmem:[#allocation2 + $0x60] sm:$0xff]  ;;  %v40_v5 = vld [vmem:[#allocation2 + $0x58] sm:$0xff]  ;;  %vm673_vm2 = vcmask 1043459   ;;  %vm675_vm3 = vcmask 1045509   ;;  %vm677_vm4 = vcmask 1047559  }
   0xf   :  { %805 = vmatpush3.msra.mxu0 %v44_v0  ;;  %v25_v4 = vld [vmem:[%s1147_s0] sm:$0xff]  ;;  %v153_v7 = vld [vmem:[#allocation2 + $0xf8] sm:$0xff]  ;;  %v39_v8 = vld [vmem:[#allocation2 + $0x50] sm:$0xff] }
  0x10   :  { %806 = vmatprep.subr.mxu0 %v43_v1  ;;  %836 = vmatprep.mubr.f32.mxu0 %v25_v4  ;;  %v154_v6 = vld [vmem:[#allocation2 + $0x100] sm:$0xff]  ;;  %v152_v9 = vld [vmem:[#allocation2 + $0xf0] sm:$0xff]  ;;  %v38_v10 = vld [vmem:[#allocation2 + $0x48] sm:$0xff] }
  0x11   :  { %807 = vmatpush3.msra.mxu0 %v43_v1  ;;  %842 = vmatprep.subr.mxu1 %v154_v6  ;;  %v151_v11 = vld [vmem:[#allocation2 + $0xe8] sm:$0xff]  ;;  %v37_v12 = vld [vmem:[#allocation2 + $0x40] sm:$0xff]  ;;  %v36_v14 = vld [vmem:[#allocation2 + $0x38] sm:$0xff] }
  0x12   :  { %808 = vmatprep.subr.mxu0 %v42_v2  ;;  %843 = vmatpush3.msra.mxu1 %v154_v6  ;;  %v150_v13 = vld [vmem:[#allocation2 + $0xe0] sm:$0xff]  ;;  %v149_v15 = vld [vmem:[#allocation2 + $0xd8] sm:$0xff]  ;;  %v35_v16 = vld [vmem:[#allocation2 + $0x30] sm:$0xff] }
  0x13   :  { %809 = vmatpush3.msra.mxu0 %v42_v2  ;;  %844 = vmatprep.subr.mxu1 %v153_v7  ;;  %v148_v17 = vld [vmem:[#allocation2 + $0xd0] sm:$0xff]  ;;  %v34_v18 = vld [vmem:[#allocation2 + $0x28] sm:$0xff]  ;;  %v33_v20 = vld [vmem:[#allocation2 + $0x20] sm:$0xff]  ;;  %v1054_v2 = vmov 0.0  }
  0x14   :  { %810 = vmatprep.subr.mxu0 %v41_v3  ;;  %845 = vmatpush3.msra.mxu1 %v153_v7  ;;  %v147_v19 = vld [vmem:[#allocation2 + $0xc8] sm:$0xff]  ;;  %v146_v21 = vld [vmem:[#allocation2 + $0xc0] sm:$0xff]  ;;  %v32_v22 = vld [vmem:[#allocation2 + $0x18] sm:$0xff] }
  0x15   :  { %811 = vmatpush3.msra.mxu0 %v41_v3  ;;  %846 = vmatprep.subr.mxu1 %v152_v9  ;;  %v145_v23 = vld [vmem:[#allocation2 + $0xb8] sm:$0xff]  ;;  %v31_v24 = vld [vmem:[#allocation2 + $0x10] sm:$0xff]  ;;  %v30_v26 = vld [vmem:[#allocation2 + $0x8] sm:$0xff] }
  0x16   :  { %812 = vmatprep.subr.mxu0 %v40_v5  ;;  %847 = vmatpush3.msra.mxu1 %v152_v9  ;;  %v144_v25 = vld [vmem:[#allocation2 + $0xb0] sm:$0xff]  ;;  %v143_v27 = vld [vmem:[#allocation2 + $0xa8] sm:$0xff]  ;;  %v29_v28 = vld [vmem:[#allocation2] sm:$0xff] }
  0x17   :  { %813 = vmatpush3.msra.mxu0 %v40_v5  ;;  %848 = vmatprep.subr.mxu1 %v151_v11  ;;  %v26_v29 = vld [vmem:[%s1147_s0 + $0x8] sm:$0xff]  ;;  %v27_v30 = vld [vmem:[%s1147_s0 + $0x10] sm:$0xff]  ;;  %v28_v31 = vld [vmem:[%s1147_s0 + $0x18] sm:$0xff] }
  0x18   :  { %814 = vmatprep.subr.mxu0 %v39_v8  ;;  %849 = vmatpush3.msra.mxu1 %v151_v11  ;;  %v142_v32 = vld [vmem:[#allocation2 + $0xa0] sm:$0xff]  ;;  %v141_v33 = vld [vmem:[#allocation2 + $0x98] sm:$0xff]  ;;  %v140_v34 = vld [vmem:[#allocation2 + $0x90] sm:$0xff] }
  0x19   :  { %815 = vmatpush3.msra.mxu0 %v39_v8  ;;  %850 = vmatprep.subr.mxu1 %v150_v13  ;;  %v139_v35 = vld [vmem:[#allocation2 + $0x88] sm:$0xff]  ;;  %v263_v37 = vld [vmem:[#allocation2 + $0x180] sm:$0xff]  ;;  %v262_v38 = vld [vmem:[#allocation2 + $0x178] sm:$0xff] }
  0x1a   :  { %816 = vmatprep.subr.mxu0 %v38_v10  ;;  %851 = vmatpush3.msra.mxu1 %v150_v13  ;;  %v264_v36 = vld [vmem:[#allocation2 + $0x188] sm:$0xff]  ;;  %v261_v39 = vld [vmem:[#allocation2 + $0x170] sm:$0xff]  ;;  %v259_v41 = vld [vmem:[#allocation2 + $0x160] sm:$0xff] }
  0x1b   :  { %817 = vmatpush3.msra.mxu0 %v38_v10  ;;  %852 = vmatprep.subr.mxu1 %v149_v15  ;;  %v260_v40 = vld [vmem:[#allocation2 + $0x168] sm:$0xff]  ;;  %v258_v42 = vld [vmem:[#allocation2 + $0x158] sm:$0xff]  ;;  %v257_v43 = vld [vmem:[#allocation2 + $0x150] sm:$0xff] }
  0x1c   :  { %818 = vmatprep.subr.mxu0 %v37_v12  ;;  %853 = vmatpush3.msra.mxu1 %v149_v15  ;;  %v256_v44 = vld [vmem:[#allocation2 + $0x148] sm:$0xff]  ;;  %v255_v45 = vld [vmem:[#allocation2 + $0x140] sm:$0xff]  ;;  %v254_v46 = vld [vmem:[#allocation2 + $0x138] sm:$0xff] }
  0x1d   :  { %819 = vmatpush3.msra.mxu0 %v37_v12  ;;  %854 = vmatprep.subr.mxu1 %v148_v17  ;;  %v253_v47 = vld [vmem:[#allocation2 + $0x130] sm:$0xff]  ;;  %v687_v48 = vld [vmem:[#allocation2 + $0x80] ss:$0 sm:$0xff]  ;;  %v252_v61 = vld [vmem:[#allocation2 + $0x128] sm:$0xff] }
  0x1e   :  { %820 = vmatprep.subr.mxu0 %v36_v14  ;;  %855 = vmatpush3.msra.mxu1 %v148_v17  ;;  %v251_v62 = vld [vmem:[#allocation2 + $0x120] sm:$0xff]  ;;  %v250_v63 = vld [vmem:[#allocation2 + $0x118] sm:$0xff]  ;;  %v249_v0 = vld [vmem:[#allocation2 + $0x110] sm:$0xff] }
  0x1f   :  { %821 = vmatpush3.msra.mxu0 %v36_v14  ;;  %856 = vmatprep.subr.mxu1 %v147_v19  ;;  %v388_v1 = vld [vmem:[#allocation2 + $0x210] sm:$0xff]  ;;  %v387_v3 = vld [vmem:[#allocation2 + $0x208] sm:$0xff]  ;;  %v386_v4 = vld [vmem:[#allocation2 + $0x200] sm:$0xff] }
  0x20   :  { %822 = vmatprep.subr.mxu0 %v35_v16  ;;  %857 = vmatpush3.msra.mxu1 %v147_v19  ;;  %v688_v5 = vld [vmem:[#allocation2 + $0x108] ss:$0 sm:$0xff]  ;;  %v384_v19 = vld [vmem:[#allocation2 + $0x1f0] sm:$0xff] }
  0x21   :  { %823 = vmatpush3.msra.mxu0 %v35_v16  ;;  %858 = vmatprep.subr.mxu1 %v146_v21 }
  0x22   :  { %824 = vmatprep.subr.mxu0 %v34_v18  ;;  %859 = vmatpush3.msra.mxu1 %v146_v21  ;;  %v382_v21 = vld [vmem:[#allocation2 + $0x1e0] sm:$0xff] }
  0x23   :  { %825 = vmatpush3.msra.mxu0 %v34_v18  ;;  %860 = vmatprep.subr.mxu1 %v145_v23  ;;  %v385_v18 = vld [vmem:[#allocation2 + $0x1f8] sm:$0xff] }
  0x24   :  { %826 = vmatprep.subr.mxu0 %v33_v20  ;;  %861 = vmatpush3.msra.mxu1 %v145_v23  ;;  %v380_v23 = vld [vmem:[#allocation2 + $0x1d0] sm:$0xff] }
  0x25   :  { %827 = vmatpush3.msra.mxu0 %v33_v20  ;;  %862 = vmatprep.subr.mxu1 %v144_v25  ;;  %v383_v20 = vld [vmem:[#allocation2 + $0x1e8] sm:$0xff] }
  0x26   :  { %828 = vmatprep.subr.mxu0 %v32_v22  ;;  %863 = vmatpush3.msra.mxu1 %v144_v25  ;;  %v378_v25 = vld [vmem:[#allocation2 + $0x1c0] sm:$0xff] }
  0x27   :  { %829 = vmatpush3.msra.mxu0 %v32_v22  ;;  %864 = vmatprep.subr.mxu1 %v143_v27  ;;  %v381_v22 = vld [vmem:[#allocation2 + $0x1d8] sm:$0xff] }
  0x28   :  { %830 = vmatprep.subr.mxu0 %v31_v24  ;;  %865 = vmatpush3.msra.mxu1 %v143_v27  ;;  %v376_v27 = vld [vmem:[#allocation2 + $0x1b0] sm:$0xff] }
  0x29   :  { %831 = vmatpush3.msra.mxu0 %v31_v24  ;;  %866 = vmatprep.subr.mxu1 %v142_v32  ;;  %v379_v24 = vld [vmem:[#allocation2 + $0x1c8] sm:$0xff] }
  0x2a   :  { %832 = vmatprep.subr.mxu0 %v30_v26  ;;  %867 = vmatpush3.msra.mxu1 %v142_v32  ;;  %v484_v32 = vld [vmem:[#allocation2 + $0x290] sm:$0xff] }
  0x2b   :  { %833 = vmatpush3.msra.mxu0 %v30_v26  ;;  %868 = vmatprep.subr.mxu1 %v141_v33  ;;  %v377_v26 = vld [vmem:[#allocation2 + $0x1b8] sm:$0xff] }
  0x2c   :  { %834 = vmatprep.subr.mxu0 %v29_v28  ;;  %869 = vmatpush3.msra.mxu1 %v141_v33  ;;  %v483_v33 = vld [vmem:[#allocation2 + $0x288] sm:$0xff] }
  0x2d   :  { %835 = vmatpush3.msra.mxu0 %v29_v28  ;;  %870 = vmatprep.subr.mxu1 %v140_v34  ;;  %v375_v28 = vld [vmem:[#allocation2 + $0x1a8] sm:$0xff] }
  0x2e   :  { %837 = vmatmul.mubr.f32.vlgmr.msra.gmra.mxu0 %v26_v29  ;;  %871 = vmatpush3.msra.mxu1 %v140_v34  ;;  %v374_v29 = vld [vmem:[#allocation2 + $0x1a0] sm:$0xff] }
  0x2f   :  { %839 = vmatprep.mubr.f32.mxu0 %v27_v30  ;;  %872 = vmatprep.subr.mxu1 %v139_v35  ;;  %v373_v30 = vld [vmem:[#allocation2 + $0x198] sm:$0xff]  ;;  %v482_v34 = vld [vmem:[#allocation2 + $0x280] sm:$0xff] }
  0x30   :  { %873 = vmatpush3.msra.mxu1 %v139_v35  ;;  %880 = vmatprep.subr.mxu0 %v264_v36  ;;  %v481_v35 = vld [vmem:[#allocation2 + $0x278] sm:$0xff] }
  0x31   :  { %881 = vmatpush3.msra.mxu0 %v264_v36  ;;  %918 = vmatprep.subr.mxu1 %v1054_v2  ;;  %v480_v36 = vld [vmem:[#allocation2 + $0x270] sm:$0xff] }
  0x32   :  { %840 = vmatmul.mubr.f32.gmra.mxu0 %v28_v31  ;;  %882 = vmatprep.subr.mxu0 %v263_v37  ;;  %v485_v31 = vld [vmem:[#allocation2 + $0x298] sm:$0xff] }
  0x33   :  { %883 = vmatpush3.msra.mxu0 %v263_v37  ;;  %v479_v37 = vld [vmem:[#allocation2 + $0x268] sm:$0xff] }
  0x34   :  { %884 = vmatprep.subr.mxu0 %v262_v38 }
  0x35   :  { %885 = vmatpush3.msra.mxu0 %v262_v38  ;;  %v478_v38 = vld [vmem:[#allocation2 + $0x260] sm:$0xff] }
  0x36   :  { %886 = vmatprep.subr.mxu0 %v261_v39 }
  0x37   :  { %887 = vmatpush3.msra.mxu0 %v261_v39  ;;  %v477_v39 = vld [vmem:[#allocation2 + $0x258] sm:$0xff] }
  0x38   :  { %888 = vmatprep.subr.mxu0 %v260_v40 }
  0x39   :  { %889 = vmatpush3.msra.mxu0 %v260_v40  ;;  %v476_v40 = vld [vmem:[#allocation2 + $0x250] sm:$0xff] }
  0x3a   :  { %890 = vmatprep.subr.mxu0 %v259_v41 }
  0x3b   :  { %891 = vmatpush3.msra.mxu0 %v259_v41  ;;  %v475_v41 = vld [vmem:[#allocation2 + $0x248] sm:$0xff] }
  0x3c   :  { %892 = vmatprep.subr.mxu0 %v258_v42 }
  0x3d   :  { %893 = vmatpush3.msra.mxu0 %v258_v42  ;;  %v474_v42 = vld [vmem:[#allocation2 + $0x240] sm:$0xff] }
  0x3e   :  { %894 = vmatprep.subr.mxu0 %v257_v43 }
  0x3f   :  { %895 = vmatpush3.msra.mxu0 %v257_v43  ;;  %v473_v43 = vld [vmem:[#allocation2 + $0x238] sm:$0xff] }
  0x40   :  { %896 = vmatprep.subr.mxu0 %v256_v44 }
  0x41   :  { %897 = vmatpush3.msra.mxu0 %v256_v44  ;;  %v689_v44 = vld [vmem:[#allocation2 + $0x190] ss:$0 sm:$0xff] }
  0x42   :  { %898 = vmatprep.subr.mxu0 %v255_v45 }
  0x43   :  { %899 = vmatpush3.msra.mxu0 %v255_v45 }
  0x44   :  { %900 = vmatprep.subr.mxu0 %v254_v46 }
  0x45   :  { %901 = vmatpush3.msra.mxu0 %v254_v46 }
  0x46   :  { %902 = vmatprep.subr.mxu0 %v253_v47 }
  0x47   :  { %903 = vmatpush3.msra.mxu0 %v253_v47 }
  0x48   :  { %904 = vmatprep.subr.mxu0 %v252_v61 }
  0x49   :  { %905 = vmatpush3.msra.mxu0 %v252_v61 }
  0x4a   :  { %906 = vmatprep.subr.mxu0 %v251_v62 }
  0x4b   :  { %907 = vmatpush3.msra.mxu0 %v251_v62 }
  0x4c   :  { %908 = vmatprep.subr.mxu0 %v250_v63 }
  0x4d   :  { %909 = vmatpush3.msra.mxu0 %v250_v63 }
  0x4e   :  { %910 = vmatprep.subr.mxu0 %v249_v0 }
  0x4f   :  { %911 = vmatpush3.msra.mxu0 %v249_v0  ;;  %v1056_v0 = vmov 1983009808  }
  0x50   :  { %953 = vmatprep.subr.mxu0 %v1054_v2 }
  0xee   :  { %v838_v49 = vpop.f32.mrf.mxu0 }
  0xef   :  { %v122_v50 = vadd.f32 %v838_v49, %v687_v48 }
  0xf0   :  { %v116_v51 = vpop.f32.mrf.mxu0 }
  0xf1   :  { %v117_v52 = vadd.f32 %v687_v48, %v116_v51  ;;  %v136_v55 = vmax.f32 %v122_v50, 0.0 }
  0xf2   :  { %v841_v53 = vpop.f32.mrf.mxu0 }
  0xf3   :  { %v135_v54 = vmax.f32 %v117_v52, 0.0  ;;  %v132_v56 = vadd.f32 %v841_v53, %v687_v48 }
  0xf4   :  { %v126_v57 = vpop.f32.mrf.mxu0 }
  0xf5   :  { %v127_v58 = vadd.f32 %v687_v48, %v126_v57  ;;  %874 = vmatprep.mubr.f32.mxu1 %v135_v54  ;;  %v138_v60 = vmax.f32 %v132_v56, 0.0 }
  0xf6   :  { %875 = vmatmul.mubr.f32.vlgmr.msra.gmra.mxu1 %v136_v55 }
  0xf7   :  { %v137_v59 = vmax.f32 %v127_v58, 0.0  ;;  %919 = vmatpush3.msra.mxu1 %v388_v1  ;;  %v654_v1 = vunpack.c.l.s4 %v1056_v0 }
  0xf8   :  { %920 = vmatprep.subr.mxu1 %v1054_v2 }
  0xf9   :  { %877 = vmatprep.mubr.f32.mxu1 %v137_v59  ;;  %921 = vmatpush3.msra.mxu1 %v387_v3  ;;  %v656_v3 = vlaneseq }
  0xfa   :  { %878 = vmatmul.mubr.f32.gmra.mxu1 %v138_v60  ;;  %922 = vmatprep.subr.mxu1 %v1054_v2 }
  0xfb   :  { %923 = vmatpush3.msra.mxu1 %v386_v4  ;;  %950 = vmatprep.mubr.msk.f32.mxu1 %vm1055_vm0, %v1054_v2 }
  0xfc   :  { %924 = vmatprep.subr.mxu1 %v1054_v2 }
  0xfd   :  { %925 = vmatpush3.msra.mxu1 %v385_v18 }
  0xfe   :  { %926 = vmatprep.subr.mxu1 %v1054_v2 }
  0xff   :  { %927 = vmatpush3.msra.mxu1 %v384_v19 }
 0x100   :  { %928 = vmatprep.subr.mxu1 %v1054_v2 }
 0x101   :  { %929 = vmatpush3.msra.mxu1 %v383_v20 }
 0x102   :  { %930 = vmatprep.subr.mxu1 %v1054_v2 }
 0x103   :  { %931 = vmatpush3.msra.mxu1 %v382_v21 }
 0x104   :  { %932 = vmatprep.subr.mxu1 %v1054_v2 }
 0x105   :  { %933 = vmatpush3.msra.mxu1 %v381_v22  ;;  %v472_v22 = vld [vmem:[#allocation2 + $0x230] sm:$0xff] }
 0x106   :  { %934 = vmatprep.subr.mxu1 %v1054_v2 }
 0x107   :  { %935 = vmatpush3.msra.mxu1 %v380_v23  ;;  %v471_v23 = vld [vmem:[#allocation2 + $0x228] sm:$0xff] }
 0x108   :  { %936 = vmatprep.subr.mxu1 %v1054_v2 }
 0x109   :  { %937 = vmatpush3.msra.mxu1 %v379_v24  ;;  %v470_v24 = vld [vmem:[#allocation2 + $0x220] sm:$0xff] }
 0x10a   :  { %938 = vmatprep.subr.mxu1 %v1054_v2 }
 0x10b   :  { %939 = vmatpush3.msra.mxu1 %v378_v25  ;;  %v577_v25 = vld [vmem:[#allocation2 + $0x320] sm:$0xff] }
 0x10c   :  { %940 = vmatprep.subr.mxu1 %v1054_v2 }
 0x10d   :  { %941 = vmatpush3.msra.mxu1 %v377_v26  ;;  %v576_v26 = vld [vmem:[#allocation2 + $0x318] sm:$0xff] }
 0x10e   :  { %942 = vmatprep.subr.mxu1 %v1054_v2 }
 0x10f   :  { %943 = vmatpush3.msra.mxu1 %v376_v27  ;;  %v575_v27 = vld [vmem:[#allocation2 + $0x310] sm:$0xff] }
 0x110   :  { %944 = vmatprep.subr.mxu1 %v1054_v2 }
 0x111   :  { %945 = vmatpush3.msra.mxu1 %v375_v28  ;;  %v574_v28 = vld [vmem:[#allocation2 + $0x308] sm:$0xff] }
 0x112   :  { %946 = vmatprep.subr.mxu1 %v1054_v2 }
 0x113   :  { %947 = vmatpush3.msra.mxu1 %v374_v29  ;;  %v573_v29 = vld [vmem:[#allocation2 + $0x300] sm:$0xff] }
 0x114   :  { %948 = vmatprep.subr.mxu1 %v1054_v2 }
 0x115   :  { %949 = vmatpush3.msra.mxu1 %v373_v30  ;;  %v572_v30 = vld [vmem:[#allocation2 + $0x2f8] sm:$0xff] }
 0x116   :  { %988 = vmatprep.subr.mxu1 %v1054_v2 }
 0x1b6   :  { %v876_v6 = vpop.f32.mrf.mxu1 }
 0x1b7   :  { %v232_v7 = vadd.f32 %v876_v6, %v688_v5 }
 0x1b8   :  { %v226_v8 = vpop.f32.mrf.mxu1 }
 0x1b9   :  { %v227_v9 = vadd.f32 %v688_v5, %v226_v8  ;;  %v246_v12 = vmax.f32 %v232_v7, 0.0  ;;  %v655_v7 = vunpack.c.0.s8 %v654_v1  ;;  %v657_v8 = vshrl.u32 %v656_v3, 7 }
 0x1ba   :  { %v879_v10 = vpop.f32.mrf.mxu1 }
 0x1bb   :  { %v245_v11 = vmax.f32 %v227_v9, 0.0  ;;  %v242_v13 = vadd.f32 %v879_v10, %v688_v5 }
 0x1bc   :  { %v236_v14 = vpop.f32.mrf.mxu1 }
 0x1bd   :  { %v237_v15 = vadd.f32 %v688_v5, %v236_v14  ;;  %912 = vmatprep.mubr.f32.mxu0 %v245_v11  ;;  %v248_v17 = vmax.f32 %v242_v13, 0.0 }
 0x1be   :  { %913 = vmatmul.mubr.f32.vlgmr.msra.gmra.mxu0 %v246_v12  ;;  %v658_v12 = vsub.s32 %v655_v7, %v657_v8 }
 0x1bf   :  { %v247_v16 = vmax.f32 %v237_v15, 0.0  ;;  %954 = vmatpush3.msra.mxu0 %v485_v31  ;;  %v571_v31 = vld [vmem:[#allocation2 + $0x2f0] sm:$0xff] }
 0x1c0   :  { %955 = vmatprep.subr.mxu0 %v1054_v2 }
 0x1c1   :  { %915 = vmatprep.mubr.f32.mxu0 %v247_v16  ;;  %956 = vmatpush3.msra.mxu0 %v484_v32  ;;  %v570_v32 = vld [vmem:[#allocation2 + $0x2e8] sm:$0xff] }
 0x1c2   :  { %916 = vmatmul.mubr.f32.gmra.mxu0 %v248_v17  ;;  %957 = vmatprep.subr.mxu0 %v1054_v2 }
 0x1c3   :  { %985 = vmatprep.mubr.msk.f32.mxu0 %vm1055_vm0, %v1054_v2  ;;  %958 = vmatpush3.msra.mxu0 %v483_v33  ;;  %v569_v33 = vld [vmem:[#allocation2 + $0x2e0] sm:$0xff] }
 0x1c4   :  { %959 = vmatprep.subr.mxu0 %v1054_v2 }
 0x1c5   :  { %960 = vmatpush3.msra.mxu0 %v482_v34  ;;  %v568_v34 = vld [vmem:[#allocation2 + $0x2d8] sm:$0xff] }
 0x1c6   :  { %961 = vmatprep.subr.mxu0 %v1054_v2 }
 0x1c7   :  { %962 = vmatpush3.msra.mxu0 %v481_v35  ;;  %v567_v35 = vld [vmem:[#allocation2 + $0x2d0] sm:$0xff] }
 0x1c8   :  { %963 = vmatprep.subr.mxu0 %v1054_v2 }
 0x1c9   :  { %964 = vmatpush3.msra.mxu0 %v480_v36  ;;  %v566_v36 = vld [vmem:[#allocation2 + $0x2c8] sm:$0xff] }
 0x1ca   :  { %965 = vmatprep.subr.mxu0 %v1054_v2 }
 0x1cb   :  { %966 = vmatpush3.msra.mxu0 %v479_v37  ;;  %v565_v37 = vld [vmem:[#allocation2 + $0x2c0] sm:$0xff] }
 0x1cc   :  { %967 = vmatprep.subr.mxu0 %v1054_v2 }
 0x1cd   :  { %968 = vmatpush3.msra.mxu0 %v478_v38  ;;  %v690_v38 = vld [vmem:[#allocation2 + $0x218] ss:$0 sm:$0xff] }
 0x1ce   :  { %969 = vmatprep.subr.mxu0 %v1054_v2 }
 0x1cf   :  { %970 = vmatpush3.msra.mxu0 %v477_v39 }
 0x1d0   :  { %971 = vmatprep.subr.mxu0 %v1054_v2 }
 0x1d1   :  { %972 = vmatpush3.msra.mxu0 %v476_v40 }
 0x1d2   :  { %973 = vmatprep.subr.mxu0 %v1054_v2 }
 0x1d3   :  { %974 = vmatpush3.msra.mxu0 %v475_v41 }
 0x1d4   :  { %975 = vmatprep.subr.mxu0 %v1054_v2 }
 0x1d5   :  { %976 = vmatpush3.msra.mxu0 %v474_v42 }
 0x1d6   :  { %977 = vmatprep.subr.mxu0 %v1054_v2 }
 0x1d7   :  { %978 = vmatpush3.msra.mxu0 %v473_v43  ;;  %v564_v43 = vld [vmem:[#allocation2 + $0x2b8] sm:$0xff] }
 0x1d8   :  { %979 = vmatprep.subr.mxu0 %v1054_v2 }
 0x1d9   :  { %980 = vmatpush3.msra.mxu0 %v472_v22 }
 0x1da   :  { %981 = vmatprep.subr.mxu0 %v1054_v2 }
 0x1db   :  { %982 = vmatpush3.msra.mxu0 %v471_v23 }
 0x1dc   :  { %983 = vmatprep.subr.mxu0 %v1054_v2 }
 0x1dd   :  { %984 = vmatpush3.msra.mxu0 %v470_v24 }
 0x27e   :  { %v914_v45 = vpop.f32.mrf.mxu0 }
 0x27f   :  { %v342_v46 = vadd.f32 %v914_v45, %v689_v44  ;;  %v562_v45 = vld [vmem:[#allocation2 + $0x2a8] sm:$0xff] }
 0x280   :  { %v336_v47 = vpop.f32.mrf.mxu0 }
 0x281   :  { %v337_v48 = vadd.f32 %v689_v44, %v336_v47  ;;  %v356_v50 = vmax.f32 %v342_v46, 0.0  ;;  %v691_v46 = vld [vmem:[#allocation2 + $0x2a0] ss:$0 sm:$0xff] }
 0x282   :  { %v917_v49 = vpop.f32.mrf.mxu0 }
 0x283   :  { %v355_v51 = vmax.f32 %v337_v48, 0.0  ;;  %v352_v52 = vadd.f32 %v917_v49, %v689_v44 }
 0x284   :  { %v346_v53 = vpop.f32.mrf.mxu0 }
 0x285   :  { %v359_v54 = vmax.f32 %v355_v51, %v356_v50  ;;  %v347_v55 = vadd.f32 %v689_v44, %v346_v53  ;;  %v358_v57 = vmax.f32 %v352_v52, 0.0  ;;  %v563_v44 = vld [vmem:[#allocation2 + $0x2b0] sm:$0xff]  ;;  %v692_v51 = vld [vmem:[#allocation2 + $0x328] ss:$0 sm:$0xff] }
 0x287   :  { %v360_v56 = vrot.slane %v359_v54, 4  ;;  %v357_v58 = vmax.f32 %v347_v55, 0.0 }
 0x289   :  { %v361_v59 = vmax.f32 %v359_v54, %v360_v56  ;;  %v366_v60 = vmax.f32 %v357_v58, %v358_v57 }
 0x28b   :  { %v362_v61 = vrot.slane %v361_v59, 2  ;;  %v367_v62 = vrot.slane %v366_v60, 4 }
 0x28d   :  { %v363_v63 = vmax.f32 %v361_v59, %v362_v61  ;;  %v368_v4 = vmax.f32 %v366_v60, %v367_v62 }
 0x28f   :  { %v369_v5 = vrot.slane %v368_v4, 2  ;;  %v364_v6 = vrot.slane %v363_v63, 1 }
 0x291   :  { %v370_v9 = vmax.f32 %v368_v4, %v369_v5  ;;  %v365_v11 = vmax.f32 %v363_v63, %v364_v6 }
 0x293   :  { %v371_v10 = vrot.slane %v370_v9, 1  ;;  %v659_v16 = vrot.slane %v365_v11, %v658_v12 }
 0x295   :  { %v372_v13 = vmax.f32 %v370_v9, %v371_v10 }
 0x297   :  { %v666_v14 = vrot.slane %v372_v13, %v658_v12  ;;  %v397_v15 = vsel %vm396_vm1, %v372_v13, %v365_v11 }
 0x298   :  { %951 = vmatmul.mubr.f32.vlgmr.msra.gmra.mxu1 %v397_v15 }
 0x299   :  { %v671_v17 = vrot.slane %v666_v14, 7  ;;  %1020 = vmatprep.mubr.msk.f32.mxu1 %vm1055_vm0, %v1054_v2  ;;  %989 = vmatpush3.msra.mxu1 %v577_v25 }
 0x29a   :  { %990 = vmatprep.subr.mxu1 %v1054_v2 }
 0x29b   :  { %v672_v18 = vsel %vm396_vm1, %v671_v17, %v659_v16  ;;  %991 = vmatpush3.msra.mxu1 %v576_v26 }
 0x29c   :  { %v674_v19 = vsel %vm673_vm2, %v671_v17, %v672_v18  ;;  %992 = vmatprep.subr.mxu1 %v1054_v2 }
 0x29d   :  { %v676_v20 = vsel %vm675_vm3, %v671_v17, %v674_v19  ;;  %993 = vmatpush3.msra.mxu1 %v575_v27 }
 0x29e   :  { %v678_v21 = vsel %vm677_vm4, %v671_v17, %v676_v20  ;;  %994 = vmatprep.subr.mxu1 %v1054_v2 }
 0x29f   :  { %680 = vst [vmem:[%s1149_s2] sm:$0x3] %v678_v21  ;;  %995 = vmatpush3.msra.mxu1 %v574_v28 }
 0x2a0   :  { %996 = vmatprep.subr.mxu1 %v1054_v2 }
 0x2a1   :  { %997 = vmatpush3.msra.mxu1 %v573_v29 }
 0x2a2   :  { %998 = vmatprep.subr.mxu1 %v1054_v2 }
 0x2a3   :  { %999 = vmatpush3.msra.mxu1 %v572_v30 }
 0x2a4   :  { %1000 = vmatprep.subr.mxu1 %v1054_v2 }
 0x2a5   :  { %1001 = vmatpush3.msra.mxu1 %v571_v31 }
 0x2a6   :  { %1002 = vmatprep.subr.mxu1 %v1054_v2 }
 0x2a7   :  { %1003 = vmatpush3.msra.mxu1 %v570_v32 }
 0x2a8   :  { %1004 = vmatprep.subr.mxu1 %v1054_v2 }
 0x2a9   :  { %1005 = vmatpush3.msra.mxu1 %v569_v33 }
 0x2aa   :  { %1006 = vmatprep.subr.mxu1 %v1054_v2 }
 0x2ab   :  { %1007 = vmatpush3.msra.mxu1 %v568_v34 }
 0x2ac   :  { %1008 = vmatprep.subr.mxu1 %v1054_v2 }
 0x2ad   :  { %1009 = vmatpush3.msra.mxu1 %v567_v35 }
 0x2ae   :  { %1010 = vmatprep.subr.mxu1 %v1054_v2 }
 0x2af   :  { %1011 = vmatpush3.msra.mxu1 %v566_v36 }
 0x2b0   :  { %1012 = vmatprep.subr.mxu1 %v1054_v2 }
 0x2b1   :  { %1013 = vmatpush3.msra.mxu1 %v565_v37 }
 0x2b2   :  { %1014 = vmatprep.subr.mxu1 %v1054_v2 }
 0x2b3   :  { %1015 = vmatpush3.msra.mxu1 %v564_v43 }
 0x2b4   :  { %1016 = vmatprep.subr.mxu1 %v1054_v2 }
 0x2b5   :  { %1017 = vmatpush3.msra.mxu1 %v563_v44 }
 0x2b6   :  { %1018 = vmatprep.subr.mxu1 %v1054_v2 }
 0x2b7   :  { %1019 = vmatpush3.msra.mxu1 %v562_v45 }
 0x358   :  { %v465_v39 = vpop.f32.mrf.mxu1 }
 0x359   :  { %v466_v40 = vadd.f32 %v690_v38, %v465_v39 }
 0x35a   :  { %v952_v41 = vpop.f32.mrf.mxu1 }
 0x35b   :  { %v469_v42 = vmax.f32 %v466_v40, 0.0 }
 0x35d   :  { %986 = vmatmul.mubr.f32.vlgmr.msra.gmra.mxu0 %v469_v42 }
 0x41d   :  { %v557_v47 = vpop.f32.mrf.mxu0 }
 0x41e   :  { %v558_v48 = vadd.f32 %v691_v46, %v557_v47 }
 0x41f   :  { %v987_v49 = vpop.f32.mrf.mxu0 }
 0x420   :  { %v561_v50 = vmax.f32 %v558_v48, 0.0 }
 0x422   :  { %1021 = vmatmul.mubr.f32.vlgmr.msra.gmra.mxu1 %v561_v50 }
 0x4e2   :  { %v649_v52 = vpop.f32.mrf.mxu1 }
 0x4e3   :  { %v650_v53 = vadd.f32 %v692_v51, %v649_v52 }
 0x4e4   :  { %v1022_v54 = vpop.f32.mrf.mxu1 }
 0x4e5   :  { %681 = vst [vmem:[%s1149_s2 + $0x2] sm:$0x3] %v650_v53 }
 0x4e6   :  { %686 = vsyncpa [#allocation3], 1 }

</bundles_post_ra>
